<compile_context>
chip_gen: v5e
topology: v5e:2x2
jax: 0.10.0
libtpu: 0.0.40
codegen_flags: <defaults>
</compile_context>

<pallas_src>
import functools

import jax
import jax.numpy as jnp
import numpy as np
from jax import lax
from jax.experimental import pallas as pl
from jax.experimental.pallas import tpu as pltpu


# ---------------------------------------------------------------------------
# Kernel
# ---------------------------------------------------------------------------

def _make_spectral_kernel(sub_b, sub_c, k_unroll):
    """Builds the per-block complex-contraction kernel (VPU broadcast-MAC).

    Block shapes seen by the kernel:
      x_ref:   (Cin,   TB, Lp)   lanes = [Re(x) | Im(x)], halves Mh = Lp // 2
      w_ref:   (2*Cin, TC, Lp)   rows [0:Cin] = [Re(w) | Im(w)]
                                 rows [Cin:]  = [Im(w) | Re(w)]
      ore_ref: (TB, TC, Mh)      Re( sum_i x[i, b, :] * w[i, o, :] )
      oim_ref: (TB, TC, Mh)      Im( sum_i x[i, b, :] * w[i, o, :] )

    The two f32 accumulators of one (sub_b, sub_c) output sub-tile stay
    register-resident; each sub-tile is stored exactly once.
    """

    def kernel(x_ref, w_ref, ore_ref, oim_ref):
        cin = x_ref.shape[0]
        tb, tc, mh = ore_ref.shape

        def mac(i, accs, b0, c0):
            acc_re, acc_im = accs
            xk = x_ref[i, b0:b0 + sub_b, :]            # (sub_b, Lp) [xr | xi]
            wp = w_ref[i, c0:c0 + sub_c, :]            # (sub_c, Lp) [wr | wi]
            wq = w_ref[cin + i, c0:c0 + sub_c, :]      # (sub_c, Lp) [wi | wr]
            pp = (xk[:, None, :] * wp[None, :, :]).astype(jnp.float32)
            pq = (xk[:, None, :] * wq[None, :, :]).astype(jnp.float32)
            # [xr*wr | xi*wi] -> Re ; [xr*wi | xi*wr] -> Im.  mh is 128-aligned
            # so the half-lane slices are pure vreg selections.
            acc_re = acc_re + (pp[:, :, :mh] - pp[:, :, mh:])
            acc_im = acc_im + (pq[:, :, :mh] + pq[:, :, mh:])
            return acc_re, acc_im

        # Static Python loops over output sub-tiles (compile-time offsets ->
        # aligned loads/stores); the Cin reduction is a fori_loop, fully
        # unrolled for small Cin so the LLO scheduler can interleave
        # vld / vmul / vadd across channels.
        for b0 in range(0, tb, sub_b):
            for c0 in range(0, tc, sub_c):
                zero = jnp.zeros((sub_b, sub_c, mh), jnp.float32)
                acc_re, acc_im = lax.fori_loop(
                    0, cin,
                    functools.partial(mac, b0=b0, c0=c0),
                    (zero, zero),
                    unroll=k_unroll)
                ore_ref[b0:b0 + sub_b, c0:c0 + sub_c, :] = acc_re
                oim_ref[b0:b0 + sub_b, c0:c0 + sub_c, :] = acc_im

    return kernel


# ---------------------------------------------------------------------------
# Tiling helpers
# ---------------------------------------------------------------------------

def _round_up(n, m):
    return ((n + m - 1) // m) * m


def _largest_divisor_leq(n, cap):
    cap = max(1, min(n, cap))
    for t in range(cap, 0, -1):
        if n % t == 0:
            return t
    return 1


def _legal_block_sizes(dim, align):
    """Descending legal sizes for a second-minor block dim: the full dim, or any
    divisor that is a multiple of `align` (TPU sublane tiling rule)."""
    sizes = [dim]
    sizes += [t for t in range(dim - 1, align - 1, -1)
              if dim % t == 0 and t % align == 0]
    return sizes


def _vmem_limit_bytes():
    """VMEM request derived from the actual chip (64 MiB/TC on v7x, 128 MiB on
    v5e/v6e); conservative 64 MiB fallback if the query is unavailable."""
    phys = 64 * 1024 * 1024
    try:
        info = pltpu.get_tpu_info()
        phys = int(getattr(info, "vmem_capacity_bytes", phys))
    except Exception:
        pass
    return int(min(phys * 3 // 4, 100 * 1024 * 1024))


def _choose_tiles(b, cin, cout, lp, in_itemsize, align, budget):
    """Largest legal (TB, TC) whose steady-state double-buffered footprint fits
    `budget`; prefers TC == Cout so the packed weight corner stays resident and
    the batch axis streams."""

    def footprint(tb, tc):
        xb = cin * tb * lp * in_itemsize          # x block
        wb = 2 * cin * tc * lp * in_itemsize      # packed weight block
        ob = tb * tc * lp * 4                     # two f32 output blocks (Mh each)
        return 2 * (xb + wb + ob)                 # double buffering

    for tc in _legal_block_sizes(cout, align):
        for tb in _legal_block_sizes(b, align):
            if footprint(tb, tc) <= budget:
                return tb, tc, footprint(tb, tc)
    tb = _legal_block_sizes(b, align)[-1]
    tc = _legal_block_sizes(cout, align)[-1]
    return tb, tc, footprint(tb, tc)


# ---------------------------------------------------------------------------
# Fused spectral contraction (both corners in one pallas_call)
# ---------------------------------------------------------------------------

def _fused_spectral_contract(x1, x2, w1, w2, compute_dtype=jnp.float32):
    """x1/x2: (B, Cin, m1, m2) complex64; w1/w2: (Cin, Cout, m1, m2) complex64.
    Returns (out1, out2), each (B, Cout, m1, m2) complex64, equal to
    einsum('bixy,ioxy->boxy', x_c, w_c)."""
    B, Cin, m1, m2 = x1.shape
    Cout = w1.shape[1]
    M = m1 * m2
    Mh = _round_up(M, 128)            # 128-aligned half width -> cheap half slices
    Lp = 2 * Mh                       # packed lane width: [Re | Im]

    def pack_x(xc):                   # -> (Cin, B, Lp), packed once (no K dup)
        xr = jnp.real(xc).reshape(B, Cin, M).transpose(1, 0, 2)
        xi = jnp.imag(xc).reshape(B, Cin, M).transpose(1, 0, 2)
        pad = ((0, 0), (0, 0), (0, Mh - M))
        return jnp.concatenate([jnp.pad(xr, pad), jnp.pad(xi, pad)],
                               axis=-1).astype(compute_dtype)

    def pack_w(wc):                   # -> (2*Cin, Cout, Lp): [wr|wi] ; [wi|wr]
        wr = jnp.real(wc).reshape(Cin, Cout, M)
        wi = jnp.imag(wc).reshape(Cin, Cout, M)
        pad = ((0, 0), (0, 0), (0, Mh - M))
        wr = jnp.pad(wr, pad)
        wi = jnp.pad(wi, pad)
        wp = jnp.concatenate([wr, wi], axis=-1)
        wq = jnp.concatenate([wi, wr], axis=-1)
        return jnp.concatenate([wp, wq], axis=0).astype(compute_dtype)

    xs = jnp.stack([pack_x(x1), pack_x(x2)], axis=0)   # (2, Cin,   B,    Lp)
    ws = jnp.stack([pack_w(w1), pack_w(w2)], axis=0)   # (2, 2*Cin, Cout, Lp)

    itemsize = jnp.dtype(compute_dtype).itemsize
    align = 8 if itemsize >= 4 else 16                 # sublane tile for inputs
    vmem_limit = _vmem_limit_bytes()
    tb, tc, fp = _choose_tiles(B, Cin, Cout, Lp, itemsize, align,
                               budget=int(vmem_limit * 0.6))
    if fp > int(vmem_limit * 0.9):
        # Even the smallest legal tiles exceed the target budget; raise the
        # request instead of silently overflowing it.
        vmem_limit = int(fp * 1.4)

    # In-kernel sub-tile: sublane-aligned output stores where possible, and the
    # two f32 accumulators kept to ~12 vregs each (register-resident).
    sub_c = 8 if tc % 8 == 0 else _largest_divisor_leq(tc, 8)
    max_sb = max(1, (12 * 1024) // max(1, sub_c * Mh))
    sub_b = _largest_divisor_leq(tb, min(8, max_sb))
    k_unroll = True if Cin <= 16 else 8

    kernel = _make_spectral_kernel(sub_b, sub_c, k_unroll)

    # Batch tiles innermost: the weight block index is constant across them, so
    # the packed corner is DMA'd once per io index and stays resident in VMEM.
    grid = (2, Cout // tc, B // tb)

    flops = 2 * B * Cout * Cin * M * 8                  # complex MAC = 4 mul + 4 add
    bytes_accessed = (xs.size * itemsize + ws.size * itemsize
                      + 2 * 2 * B * Cout * Mh * 4)

    out_re, out_im = pl.pallas_call(
        kernel,
        grid=grid,
        in_specs=[
            # If profiling shows exposed DMA on this streaming operand, add
            # pipeline_mode=pl.Buffered(3) here (and budget 3x the x block).
            pl.BlockSpec((None, Cin, tb, Lp), lambda c, io, ib: (c, 0, ib, 0)),
            pl.BlockSpec((None, 2 * Cin, tc, Lp), lambda c, io, ib: (c, 0, io, 0)),
        ],
        out_specs=(
            pl.BlockSpec((None, tb, tc, Mh), lambda c, io, ib: (c, ib, io, 0)),
            pl.BlockSpec((None, tb, tc, Mh), lambda c, io, ib: (c, ib, io, 0)),
        ),
        out_shape=(
            jax.ShapeDtypeStruct((2, B, Cout, Mh), jnp.float32),
            jax.ShapeDtypeStruct((2, B, Cout, Mh), jnp.float32),
        ),
        compiler_params=pltpu.CompilerParams(
            # TODO(synk): on v7x, verify with xprof that the grid shards across
            # both TensorCores; if not, switch the leading axis to CORE_PARALLEL.
            dimension_semantics=("parallel", "parallel", "arbitrary"),
            vmem_limit_bytes=vmem_limit,
        ),
        cost_estimate=pl.CostEstimate(
            flops=flops, transcendentals=0, bytes_accessed=bytes_accessed),
    )(xs, ws)

    out_re = out_re[:, :, :, :M].reshape(2, B, Cout, m1, m2)
    out_im = out_im[:, :, :, :M].reshape(2, B, Cout, m1, m2)
    out_c = lax.complex(out_re, out_im)
    return out_c[0], out_c[1]


# ---------------------------------------------------------------------------
# SpectralConv2d forward
# ---------------------------------------------------------------------------

def spectral_conv2d_forward(x, weights1, weights2, modes1, modes2,
                            compute_dtype=jnp.float32):
    """Matches SpectralConv2d.forward for NCHW float32 input x: (B, Cin, H, W).

    compute_dtype=jnp.bfloat16 halves HBM/VMEM traffic for the packed operands
    on v6e/v7x (accumulation stays f32 in-kernel, but the packed inputs are
    quantized to bf16); keep float32 on v5e (no bf16 VALU)."""
    B, Cin, H, W = x.shape
    Cout = weights1.shape[1]
    Wf = W // 2 + 1

    # TODO(synk): FFT has no Pallas primitive on TPU; rfft2 / irfft2 stay in XLA.
    x_ft = jnp.fft.rfft2(x).astype(jnp.complex64)            # (B, Cin, H, Wf)

    # TODO(synk): for very wide channels (2*Cin >= ~128) on v5e, an MXU batched
    # matmul formulation may beat this VPU path; not implemented here.
    out1, out2 = _fused_spectral_contract(
        x_ft[:, :, :modes1, :modes2],
        x_ft[:, :, H - modes1:, :modes2],
        weights1, weights2, compute_dtype=compute_dtype)

    if H >= 2 * modes1:
        # One concat + one pad instead of full-size zeros + two complex scatters.
        mid = jnp.zeros((B, Cout, H - 2 * modes1, modes2), jnp.complex64)
        col = jnp.concatenate([out1, mid, out2], axis=2)      # (B, Cout, H, modes2)
        out_ft = jnp.pad(col, ((0, 0), (0, 0), (0, 0), (0, Wf - modes2)))
    else:
        # Overlapping corners: keep PyTorch semantics (second write wins).
        out_ft = jnp.zeros((B, Cout, H, Wf), jnp.complex64)
        out_ft = out_ft.at[:, :, :modes1, :modes2].set(out1)
        out_ft = out_ft.at[:, :, H - modes1:, :modes2].set(out2)

    return jnp.fft.irfft2(out_ft, s=(H, W)).astype(jnp.float32)


def _reference_forward(x, weights1, weights2, modes1, modes2):
    """Pure-JAX reference (mirrors the PyTorch module) for validation."""
    B, Cin, H, W = x.shape
    Cout = weights1.shape[1]
    Wf = W // 2 + 1
    x_ft = jnp.fft.rfft2(x).astype(jnp.complex64)
    out_ft = jnp.zeros((B, Cout, H, Wf), jnp.complex64)
    out_ft = out_ft.at[:, :, :modes1, :modes2].set(
        jnp.einsum('bixy,ioxy->boxy', x_ft[:, :, :modes1, :modes2], weights1))
    out_ft = out_ft.at[:, :, H - modes1:, :modes2].set(
        jnp.einsum('bixy,ioxy->boxy', x_ft[:, :, H - modes1:, :modes2], weights2))
    return jnp.fft.irfft2(out_ft, s=(H, W)).astype(jnp.float32)


if __name__ == "__main__":
    # Small shapes consistent with the PyTorch module.
    in_channels, out_channels = 4, 4
    modes1, modes2 = 4, 4
    B, H, W = 2, 16, 16

    key = jax.random.PRNGKey(0)
    kx, kw1r, kw1i, kw2r, kw2i = jax.random.split(key, 5)

    # scale * U[0,1) complex params, like torch.rand(..., dtype=cfloat).
    scale = 1.0 / (in_channels * out_channels)
    wshape = (in_channels, out_channels, modes1, modes2)
    weights1 = scale * lax.complex(
        jax.random.uniform(kw1r, wshape, jnp.float32),
        jax.random.uniform(kw1i, wshape, jnp.float32))
    weights2 = scale * lax.complex(
        jax.random.uniform(kw2r, wshape, jnp.float32),
        jax.random.uniform(kw2i, wshape, jnp.float32))

    x = jax.random.normal(kx, (B, in_channels, H, W), jnp.float32)

    fwd = jax.jit(functools.partial(spectral_conv2d_forward,
                                    modes1=modes1, modes2=modes2))
    out = jax.block_until_ready(fwd(x, weights1, weights2))

    ref = jax.block_until_ready(
        _reference_forward(x, weights1, weights2, modes1, modes2))
    np.testing.assert_allclose(np.asarray(out), np.asarray(ref),
                               atol=1e-4, rtol=1e-4)

    print("KERNEL_OK")
</pallas_src>

<mosaic_0001>
module attributes {stable_mosaic.version = 11 : i64} {
  func.func @kernel(%arg0: i32, %arg1: i32, %arg2: i32, %arg3: memref<1x4x2x256xf32, #tpu.memory_space<vmem>>, %arg4: memref<1x8x4x256xf32, #tpu.memory_space<vmem>>, %arg5: memref<1x2x4x128xf32, #tpu.memory_space<vmem>>, %arg6: memref<1x2x4x128xf32, #tpu.memory_space<vmem>>) attributes {dimension_semantics = [#tpu.dimension_semantics<parallel>, #tpu.dimension_semantics<parallel>, #tpu.dimension_semantics<arbitrary>], iteration_bounds = array<i64: 2, 1, 1>, scalar_prefetch = 0 : i64, scratch_operands = 0 : i64, tpu.core_type = #tpu.core_type<tc>, window_params = [{transform_indices = @transform_0, window_bounds = array<i64: 1, 4, 2, 256>}, {transform_indices = @transform_1, window_bounds = array<i64: 1, 8, 4, 256>}, {transform_indices = @transform_2, window_bounds = array<i64: 1, 2, 4, 128>}, {transform_indices = @transform_3, window_bounds = array<i64: 1, 2, 4, 128>}]} {
    %cst = arith.constant 0.000000e+00 : f32
    %0 = vector.broadcast %cst : f32 to vector<2x4x128xf32>
    %c0_i32 = arith.constant 0 : i32
    %c0 = arith.constant 0 : index
    %1 = arith.index_cast %c0_i32 : i32 to index
    %c0_0 = arith.constant 0 : index
    %c0_1 = arith.constant 0 : index
    %2 = vector.load %arg3[%c0, %1, %c0_0, %c0_1] : memref<1x4x2x256xf32, #tpu.memory_space<vmem>>, vector<1x1x2x256xf32>
    %3 = vector.shape_cast %2 : vector<1x1x2x256xf32> to vector<2x256xf32>
    %c0_2 = arith.constant 0 : index
    %4 = arith.index_cast %c0_i32 : i32 to index
    %c0_3 = arith.constant 0 : index
    %c0_4 = arith.constant 0 : index
    %5 = vector.load %arg4[%c0_2, %4, %c0_3, %c0_4] : memref<1x8x4x256xf32, #tpu.memory_space<vmem>>, vector<1x1x4x256xf32>
    %6 = vector.shape_cast %5 : vector<1x1x4x256xf32> to vector<4x256xf32>
    %c4_i32 = arith.constant 4 : i32
    %7 = arith.addi %c4_i32, %c0_i32 : i32
    %c0_5 = arith.constant 0 : index
    %8 = arith.index_cast %7 : i32 to index
    %c0_6 = arith.constant 0 : index
    %c0_7 = arith.constant 0 : index
    %9 = vector.load %arg4[%c0_5, %8, %c0_6, %c0_7] : memref<1x8x4x256xf32, #tpu.memory_space<vmem>>, vector<1x1x4x256xf32>
    %10 = vector.shape_cast %9 : vector<1x1x4x256xf32> to vector<4x256xf32>
    %11 = vector.shape_cast %3 : vector<2x256xf32> to vector<2x1x256xf32>
    %12 = vector.shape_cast %6 : vector<4x256xf32> to vector<1x4x256xf32>
    %13 = vector.broadcast %11 : vector<2x1x256xf32> to vector<2x4x256xf32>
    %14 = vector.broadcast %12 : vector<1x4x256xf32> to vector<2x4x256xf32>
    %15 = arith.mulf %13, %14 : vector<2x4x256xf32>
    %16 = vector.shape_cast %3 : vector<2x256xf32> to vector<2x1x256xf32>
    %17 = vector.shape_cast %10 : vector<4x256xf32> to vector<1x4x256xf32>
    %18 = vector.broadcast %16 : vector<2x1x256xf32> to vector<2x4x256xf32>
    %19 = vector.broadcast %17 : vector<1x4x256xf32> to vector<2x4x256xf32>
    %20 = arith.mulf %18, %19 : vector<2x4x256xf32>
    %21 = vector.extract_strided_slice %15 {offsets = [0, 0, 0], sizes = [2, 4, 128], strides = [1, 1, 1]} : vector<2x4x256xf32> to vector<2x4x128xf32>
    %22 = vector.extract_strided_slice %15 {offsets = [0, 0, 128], sizes = [2, 4, 128], strides = [1, 1, 1]} : vector<2x4x256xf32> to vector<2x4x128xf32>
    %23 = arith.subf %21, %22 : vector<2x4x128xf32>
    %24 = arith.addf %0, %23 : vector<2x4x128xf32>
    %25 = vector.extract_strided_slice %20 {offsets = [0, 0, 0], sizes = [2, 4, 128], strides = [1, 1, 1]} : vector<2x4x256xf32> to vector<2x4x128xf32>
    %26 = vector.extract_strided_slice %20 {offsets = [0, 0, 128], sizes = [2, 4, 128], strides = [1, 1, 1]} : vector<2x4x256xf32> to vector<2x4x128xf32>
    %27 = arith.addf %25, %26 : vector<2x4x128xf32>
    %28 = arith.addf %0, %27 : vector<2x4x128xf32>
    %c1_i32 = arith.constant 1 : i32
    %c0_8 = arith.constant 0 : index
    %29 = arith.index_cast %c1_i32 : i32 to index
    %c0_9 = arith.constant 0 : index
    %c0_10 = arith.constant 0 : index
    %30 = vector.load %arg3[%c0_8, %29, %c0_9, %c0_10] : memref<1x4x2x256xf32, #tpu.memory_space<vmem>>, vector<1x1x2x256xf32>
    %31 = vector.shape_cast %30 : vector<1x1x2x256xf32> to vector<2x256xf32>
    %c0_11 = arith.constant 0 : index
    %32 = arith.index_cast %c1_i32 : i32 to index
    %c0_12 = arith.constant 0 : index
    %c0_13 = arith.constant 0 : index
    %33 = vector.load %arg4[%c0_11, %32, %c0_12, %c0_13] : memref<1x8x4x256xf32, #tpu.memory_space<vmem>>, vector<1x1x4x256xf32>
    %34 = vector.shape_cast %33 : vector<1x1x4x256xf32> to vector<4x256xf32>
    %c4_i32_14 = arith.constant 4 : i32
    %35 = arith.addi %c4_i32_14, %c1_i32 : i32
    %c0_15 = arith.constant 0 : index
    %36 = arith.index_cast %35 : i32 to index
    %c0_16 = arith.constant 0 : index
    %c0_17 = arith.constant 0 : index
    %37 = vector.load %arg4[%c0_15, %36, %c0_16, %c0_17] : memref<1x8x4x256xf32, #tpu.memory_space<vmem>>, vector<1x1x4x256xf32>
    %38 = vector.shape_cast %37 : vector<1x1x4x256xf32> to vector<4x256xf32>
    %39 = vector.shape_cast %31 : vector<2x256xf32> to vector<2x1x256xf32>
    %40 = vector.shape_cast %34 : vector<4x256xf32> to vector<1x4x256xf32>
    %41 = vector.broadcast %39 : vector<2x1x256xf32> to vector<2x4x256xf32>
    %42 = vector.broadcast %40 : vector<1x4x256xf32> to vector<2x4x256xf32>
    %43 = arith.mulf %41, %42 : vector<2x4x256xf32>
    %44 = vector.shape_cast %31 : vector<2x256xf32> to vector<2x1x256xf32>
    %45 = vector.shape_cast %38 : vector<4x256xf32> to vector<1x4x256xf32>
    %46 = vector.broadcast %44 : vector<2x1x256xf32> to vector<2x4x256xf32>
    %47 = vector.broadcast %45 : vector<1x4x256xf32> to vector<2x4x256xf32>
    %48 = arith.mulf %46, %47 : vector<2x4x256xf32>
    %49 = vector.extract_strided_slice %43 {offsets = [0, 0, 0], sizes = [2, 4, 128], strides = [1, 1, 1]} : vector<2x4x256xf32> to vector<2x4x128xf32>
    %50 = vector.extract_strided_slice %43 {offsets = [0, 0, 128], sizes = [2, 4, 128], strides = [1, 1, 1]} : vector<2x4x256xf32> to vector<2x4x128xf32>
    %51 = arith.subf %49, %50 : vector<2x4x128xf32>
    %52 = arith.addf %24, %51 : vector<2x4x128xf32>
    %53 = vector.extract_strided_slice %48 {offsets = [0, 0, 0], sizes = [2, 4, 128], strides = [1, 1, 1]} : vector<2x4x256xf32> to vector<2x4x128xf32>
    %54 = vector.extract_strided_slice %48 {offsets = [0, 0, 128], sizes = [2, 4, 128], strides = [1, 1, 1]} : vector<2x4x256xf32> to vector<2x4x128xf32>
    %55 = arith.addf %53, %54 : vector<2x4x128xf32>
    %56 = arith.addf %28, %55 : vector<2x4x128xf32>
    %c2_i32 = arith.constant 2 : i32
    %c0_18 = arith.constant 0 : index
    %57 = arith.index_cast %c2_i32 : i32 to index
    %c0_19 = arith.constant 0 : index
    %c0_20 = arith.constant 0 : index
    %58 = vector.load %arg3[%c0_18, %57, %c0_19, %c0_20] : memref<1x4x2x256xf32, #tpu.memory_space<vmem>>, vector<1x1x2x256xf32>
    %59 = vector.shape_cast %58 : vector<1x1x2x256xf32> to vector<2x256xf32>
    %c0_21 = arith.constant 0 : index
    %60 = arith.index_cast %c2_i32 : i32 to index
    %c0_22 = arith.constant 0 : index
    %c0_23 = arith.constant 0 : index
    %61 = vector.load %arg4[%c0_21, %60, %c0_22, %c0_23] : memref<1x8x4x256xf32, #tpu.memory_space<vmem>>, vector<1x1x4x256xf32>
    %62 = vector.shape_cast %61 : vector<1x1x4x256xf32> to vector<4x256xf32>
    %c4_i32_24 = arith.constant 4 : i32
    %63 = arith.addi %c4_i32_24, %c2_i32 : i32
    %c0_25 = arith.constant 0 : index
    %64 = arith.index_cast %63 : i32 to index
    %c0_26 = arith.constant 0 : index
    %c0_27 = arith.constant 0 : index
    %65 = vector.load %arg4[%c0_25, %64, %c0_26, %c0_27] : memref<1x8x4x256xf32, #tpu.memory_space<vmem>>, vector<1x1x4x256xf32>
    %66 = vector.shape_cast %65 : vector<1x1x4x256xf32> to vector<4x256xf32>
    %67 = vector.shape_cast %59 : vector<2x256xf32> to vector<2x1x256xf32>
    %68 = vector.shape_cast %62 : vector<4x256xf32> to vector<1x4x256xf32>
    %69 = vector.broadcast %67 : vector<2x1x256xf32> to vector<2x4x256xf32>
    %70 = vector.broadcast %68 : vector<1x4x256xf32> to vector<2x4x256xf32>
    %71 = arith.mulf %69, %70 : vector<2x4x256xf32>
    %72 = vector.shape_cast %59 : vector<2x256xf32> to vector<2x1x256xf32>
    %73 = vector.shape_cast %66 : vector<4x256xf32> to vector<1x4x256xf32>
    %74 = vector.broadcast %72 : vector<2x1x256xf32> to vector<2x4x256xf32>
    %75 = vector.broadcast %73 : vector<1x4x256xf32> to vector<2x4x256xf32>
    %76 = arith.mulf %74, %75 : vector<2x4x256xf32>
    %77 = vector.extract_strided_slice %71 {offsets = [0, 0, 0], sizes = [2, 4, 128], strides = [1, 1, 1]} : vector<2x4x256xf32> to vector<2x4x128xf32>
    %78 = vector.extract_strided_slice %71 {offsets = [0, 0, 128], sizes = [2, 4, 128], strides = [1, 1, 1]} : vector<2x4x256xf32> to vector<2x4x128xf32>
    %79 = arith.subf %77, %78 : vector<2x4x128xf32>
    %80 = arith.addf %52, %79 : vector<2x4x128xf32>
    %81 = vector.extract_strided_slice %76 {offsets = [0, 0, 0], sizes = [2, 4, 128], strides = [1, 1, 1]} : vector<2x4x256xf32> to vector<2x4x128xf32>
    %82 = vector.extract_strided_slice %76 {offsets = [0, 0, 128], sizes = [2, 4, 128], strides = [1, 1, 1]} : vector<2x4x256xf32> to vector<2x4x128xf32>
    %83 = arith.addf %81, %82 : vector<2x4x128xf32>
    %84 = arith.addf %56, %83 : vector<2x4x128xf32>
    %c3_i32 = arith.constant 3 : i32
    %c0_28 = arith.constant 0 : index
    %85 = arith.index_cast %c3_i32 : i32 to index
    %c0_29 = arith.constant 0 : index
    %c0_30 = arith.constant 0 : index
    %86 = vector.load %arg3[%c0_28, %85, %c0_29, %c0_30] : memref<1x4x2x256xf32, #tpu.memory_space<vmem>>, vector<1x1x2x256xf32>
    %87 = vector.shape_cast %86 : vector<1x1x2x256xf32> to vector<2x256xf32>
    %c0_31 = arith.constant 0 : index
    %88 = arith.index_cast %c3_i32 : i32 to index
    %c0_32 = arith.constant 0 : index
    %c0_33 = arith.constant 0 : index
    %89 = vector.load %arg4[%c0_31, %88, %c0_32, %c0_33] : memref<1x8x4x256xf32, #tpu.memory_space<vmem>>, vector<1x1x4x256xf32>
    %90 = vector.shape_cast %89 : vector<1x1x4x256xf32> to vector<4x256xf32>
    %c4_i32_34 = arith.constant 4 : i32
    %91 = arith.addi %c4_i32_34, %c3_i32 : i32
    %c0_35 = arith.constant 0 : index
    %92 = arith.index_cast %91 : i32 to index
    %c0_36 = arith.constant 0 : index
    %c0_37 = arith.constant 0 : index
    %93 = vector.load %arg4[%c0_35, %92, %c0_36, %c0_37] : memref<1x8x4x256xf32, #tpu.memory_space<vmem>>, vector<1x1x4x256xf32>
    %94 = vector.shape_cast %93 : vector<1x1x4x256xf32> to vector<4x256xf32>
    %95 = vector.shape_cast %87 : vector<2x256xf32> to vector<2x1x256xf32>
    %96 = vector.shape_cast %90 : vector<4x256xf32> to vector<1x4x256xf32>
    %97 = vector.broadcast %95 : vector<2x1x256xf32> to vector<2x4x256xf32>
    %98 = vector.broadcast %96 : vector<1x4x256xf32> to vector<2x4x256xf32>
    %99 = arith.mulf %97, %98 : vector<2x4x256xf32>
    %100 = vector.shape_cast %87 : vector<2x256xf32> to vector<2x1x256xf32>
    %101 = vector.shape_cast %94 : vector<4x256xf32> to vector<1x4x256xf32>
    %102 = vector.broadcast %100 : vector<2x1x256xf32> to vector<2x4x256xf32>
    %103 = vector.broadcast %101 : vector<1x4x256xf32> to vector<2x4x256xf32>
    %104 = arith.mulf %102, %103 : vector<2x4x256xf32>
    %105 = vector.extract_strided_slice %99 {offsets = [0, 0, 0], sizes = [2, 4, 128], strides = [1, 1, 1]} : vector<2x4x256xf32> to vector<2x4x128xf32>
    %106 = vector.extract_strided_slice %99 {offsets = [0, 0, 128], sizes = [2, 4, 128], strides = [1, 1, 1]} : vector<2x4x256xf32> to vector<2x4x128xf32>
    %107 = arith.subf %105, %106 : vector<2x4x128xf32>
    %108 = arith.addf %80, %107 : vector<2x4x128xf32>
    %109 = vector.extract_strided_slice %104 {offsets = [0, 0, 0], sizes = [2, 4, 128], strides = [1, 1, 1]} : vector<2x4x256xf32> to vector<2x4x128xf32>
    %110 = vector.extract_strided_slice %104 {offsets = [0, 0, 128], sizes = [2, 4, 128], strides = [1, 1, 1]} : vector<2x4x256xf32> to vector<2x4x128xf32>
    %111 = arith.addf %109, %110 : vector<2x4x128xf32>
    %112 = arith.addf %84, %111 : vector<2x4x128xf32>
    %c4_i32_38 = arith.constant 4 : i32
    %c0_39 = arith.constant 0 : index
    %c0_40 = arith.constant 0 : index
    %c0_41 = arith.constant 0 : index
    %c0_42 = arith.constant 0 : index
    %113 = vector.load %arg5[%c0_39, %c0_40, %c0_41, %c0_42] : memref<1x2x4x128xf32, #tpu.memory_space<vmem>>, vector<1x2x4x128xf32>
    %114 = vector.shape_cast %113 : vector<1x2x4x128xf32> to vector<2x4x128xf32>
    %115 = vector.shape_cast %108 : vector<2x4x128xf32> to vector<1x2x4x128xf32>
    tpu.vector_store %arg5[%c0_39, %c0_40, %c0_41, %c0_42], %115 {strides = array<i32>} : memref<1x2x4x128xf32, #tpu.memory_space<vmem>>, vector<1x2x4x128xf32>,
    %c0_43 = arith.constant 0 : index
    %c0_44 = arith.constant 0 : index
    %c0_45 = arith.constant 0 : index
    %c0_46 = arith.constant 0 : index
    %116 = vector.load %arg6[%c0_43, %c0_44, %c0_45, %c0_46] : memref<1x2x4x128xf32, #tpu.memory_space<vmem>>, vector<1x2x4x128xf32>
    %117 = vector.shape_cast %116 : vector<1x2x4x128xf32> to vector<2x4x128xf32>
    %118 = vector.shape_cast %112 : vector<2x4x128xf32> to vector<1x2x4x128xf32>
    tpu.vector_store %arg6[%c0_43, %c0_44, %c0_45, %c0_46], %118 {strides = array<i32>} : memref<1x2x4x128xf32, #tpu.memory_space<vmem>>, vector<1x2x4x128xf32>,
    return
  }
  func.func @transform_0(%arg0: i32, %arg1: i32, %arg2: i32) -> (i32, i32, i32, i32) {
    %c0_i32 = arith.constant 0 : i32
    %c0_i32_0 = arith.constant 0 : i32
    %c0_i32_1 = arith.constant 0 : i32
    return %arg0, %c0_i32, %arg2, %c0_i32_0 : i32, i32, i32, i32
  }
  func.func @transform_1(%arg0: i32, %arg1: i32, %arg2: i32) -> (i32, i32, i32, i32) {
    %c0_i32 = arith.constant 0 : i32
    %c0_i32_0 = arith.constant 0 : i32
    %c0_i32_1 = arith.constant 0 : i32
    return %arg0, %c0_i32, %arg1, %c0_i32_0 : i32, i32, i32, i32
  }
  func.func @transform_2(%arg0: i32, %arg1: i32, %arg2: i32) -> (i32, i32, i32, i32) {
    %c0_i32 = arith.constant 0 : i32
    %c0_i32_0 = arith.constant 0 : i32
    return %arg0, %arg2, %arg1, %c0_i32 : i32, i32, i32, i32
  }
  func.func @transform_3(%arg0: i32, %arg1: i32, %arg2: i32) -> (i32, i32, i32, i32) {
    %c0_i32 = arith.constant 0 : i32
    %c0_i32_0 = arith.constant 0 : i32
    return %arg0, %arg2, %arg1, %c0_i32 : i32, i32, i32, i32
  }
}

</mosaic_0001>

<bundles_post_ra>
// kernel: custom-call
= control target key start
LH: loop header
LB: loop body
LE: loop exit
PB: predicated region body
PF: predicated region fallthrough
CT: control target
= control target key end

     0   :  { %2 = vsyncpa [#allocation0], 0  ;;  %s55_s0 = inlined_call_operand.hbm [shape: c64[4,4,4,4], index: 0, kind: input, shape index: {}]   ;;  %s56_s1 = inlined_call_operand.vmem [shape: f32[4,4,4,4], index: 1, kind: output, shape index: {}]  }
   0x1   :  { %s4_s8 = sshll.u32 %s55_s0, 4  ;;  %s6_s11 = sshll.u32 %s56_s1, 4  ;;  %s5_s8 = int_to_ptr.hbm [resolvable:$true] %s4_s8  ;;  %s7_s11 = int_to_ptr.vmem [resolvable:$true] %s6_s11 }
   0x2   :  { %9 = dma.hbm_to_vmem [thread:$0]  %s5_s8, 1024, %s7_s11, [#allocation0] }
   0x3   :  { %37 = dma.done.wait [#allocation0], 1024  }
   0x4   :  { %38 = vsyncadd [#allocation0], 4294966272 }
   0x5   :  { %12 = vsyncpa [#allocation0], 1 }

// kernel: custom-call.1
= control target key start
LH: loop header
LB: loop body
LE: loop exit
PB: predicated region body
PF: predicated region fallthrough
CT: control target
= control target key end

     0   :  { %s56_s0 = inlined_call_operand.hbm [shape: c64[4,4,4,4], index: 0, kind: input, shape index: {}]   ;;  %s57_s1 = inlined_call_operand.vmem [shape: f32[4,4,4,4], index: 1, kind: output, shape index: {}]  }
   0x1   :  { %s2_s8 = scalar_lea.hbm %s56_s0, 64 }
   0x2   :  { %3 = vsyncpa [#allocation0], 0  ;;  %s5_s9 = sshll.u32 %s2_s8, 4  ;;  %s7_s12 = sshll.u32 %s57_s1, 4  ;;  %s6_s9 = int_to_ptr.hbm [resolvable:$true] %s5_s9  ;;  %s8_s12 = int_to_ptr.vmem [resolvable:$true] %s7_s12 }
   0x3   :  { %10 = dma.hbm_to_vmem [thread:$0]  %s6_s9, 1024, %s8_s12, [#allocation0] }
   0x4   :  { %38 = dma.done.wait [#allocation0], 1024  }
   0x5   :  { %39 = vsyncadd [#allocation0], 4294966272 }
   0x6   :  { %13 = vsyncpa [#allocation0], 1 }

// kernel: squeeze.2
= control target key start
LH: loop header
LB: loop body
LE: loop exit
PB: predicated region body
PF: predicated region fallthrough
CT: control target
= control target key end

     0   :  { %vm11_vm0 = vcmask 31744   ;;  %s102_s10 = smov 116   ;;  %s103_s11 = smov 120   ;;  %s152_s0 = inlined_call_operand.vmem [shape: f32[1,2,4,16], index: 0, kind: input, shape index: {}]   ;;  %s153_s1 = inlined_call_operand.vmem [shape: f32[2,4,4,4], index: 1, kind: output, shape index: {}]  }
   0x1   :  { %v90_v0 = vld [vmem:[%s152_s0 + $0x4] sm:$0xf]  ;;  %v8_v1 = vld [vmem:[%s152_s0] sm:$0xf]  ;;  %s101_s0 = smov 124  }
   0x2   :  { %7 = vst [vmem:[#allocation1 + $0x8] sm:$0xf] %v90_v0 }
   0x3   :  { %9 = vst [vmem:[#allocation1] sm:$0xf] %v8_v1 }
   0x9   :  { %v14_v2 = vld [vmem:[#allocation1 + $0x8] sm:$0xf]  }
   0xa   :  { %v10_v3 = vld [vmem:[#allocation1] sm:$0xf]   ;;  %17 = vst.msk [vmem:[#allocation0 + $0x20] ss:$8 sm:$0xf] %vm11_vm0, %v14_v2  }
   0xb   :  { %v18_v4 = vld.sshfl [vmem:[#allocation1] sm:$0xff pattern:$0xba983210]   ;;  %12 = vst.msk [vmem:[#allocation0] ss:$8 sm:$0xf] %vm11_vm0, %v10_v3  }
   0xc   :  { %19 = vrot.lane.b32.xlu0 %v18_v4, %s101_s0  ;;  %35 = vrot.lane.b32.xlu1 %v18_v4, %s102_s10 }
  0x14   :  { %27 = vrot.lane.b32.xlu0 %v18_v4, %s103_s11 }
  0x7e   :  { %v20_v5 = vpop.permute.xlu0 %19   ;;  %v36_v6 = vpop.permute.xlu1 %35  }
  0x7f   :  { %23 = vst.msk [vmem:[#allocation0 + $0x1] ss:$8 sm:$0xf] %vm11_vm0, %v20_v5  }
  0x80   :  { %25 = vst.msk [vmem:[#allocation0 + $0x1] ss:$8 sm:$0xf0] %vm11_vm0, %v20_v5  }
  0x81   :  { %39 = vst.msk [vmem:[#allocation0 + $0x3] ss:$8 sm:$0xf] %vm11_vm0, %v36_v6  }
  0x82   :  { %41 = vst.msk [vmem:[#allocation0 + $0x3] ss:$8 sm:$0xf0] %vm11_vm0, %v36_v6  }
  0x86   :  { %v28_v7 = vpop.permute.xlu0 %27  }
  0x87   :  { %31 = vst.msk [vmem:[#allocation0 + $0x2] ss:$8 sm:$0xf] %vm11_vm0, %v28_v7  }
  0x88   :  { %33 = vst.msk [vmem:[#allocation0 + $0x2] ss:$8 sm:$0xf0] %vm11_vm0, %v28_v7  }
  0x8e   :  { %v44_v8 = vld [vmem:[#allocation0] sm:$0xf]  ;;  %v49_v9 = vld [vmem:[#allocation0 + $0x8] sm:$0xf]  ;;  %v55_v10 = vld [vmem:[#allocation0 + $0x10] sm:$0xf] }
  0x8f   :  { %47 = vst [vmem:[%s153_s1] sm:$0xf] %v44_v8  ;;  %v61_v11 = vld [vmem:[#allocation0 + $0x18] sm:$0xf]  ;;  %v67_v12 = vld [vmem:[#allocation0 + $0x20] sm:$0xf] }
  0x90   :  { %91 = vst [vmem:[%s153_s1 + $0x4] sm:$0xf] %v49_v9  ;;  %v73_v13 = vld [vmem:[#allocation0 + $0x28] sm:$0xf]  ;;  %v79_v14 = vld [vmem:[#allocation0 + $0x30] sm:$0xf] }
  0x91   :  { %92 = vst [vmem:[%s153_s1 + $0x8] sm:$0xf] %v55_v10  ;;  %v85_v15 = vld [vmem:[#allocation0 + $0x38] sm:$0xf] }
  0x92   :  { %93 = vst [vmem:[%s153_s1 + $0xc] sm:$0xf] %v61_v11 }
  0x93   :  { %94 = vst [vmem:[%s153_s1 + $0x10] sm:$0xf] %v67_v12 }
  0x94   :  { %95 = vst [vmem:[%s153_s1 + $0x14] sm:$0xf] %v73_v13 }
  0x95   :  { %96 = vst [vmem:[%s153_s1 + $0x18] sm:$0xf] %v79_v14 }
  0x96   :  { %97 = vst [vmem:[%s153_s1 + $0x1c] sm:$0xf] %v85_v15 }

// kernel: reverse.0
= control target key start
LH: loop header
LB: loop body
LE: loop exit
PB: predicated region body
PF: predicated region fallthrough
CT: control target
= control target key end

     0   :  { %v72_v3 = vlaneseq  ;;  %v65_v6 = vld [vmem:[#allocation0 + $0x7] ss:$-1 sm:$0xff]  ;;  %v79_v8 = vld [vmem:[#allocation0 + $0x17] ss:$-1 sm:$0xff]  ;;  %s331_s0 = inlined_call_operand.vmem [shape: f32[2,4,16,7], index: 0, kind: input, shape index: {}]   ;;  %s332_s1 = inlined_call_operand.vmem [shape: f32[2,4,16,7], index: 1, kind: output, shape index: {}]  }
   0x1   :  { %v45_v0 = vld [vmem:[%s331_s0] sm:$0xff]  ;;  %v47_v1 = vld [vmem:[%s331_s0 + $0x8] sm:$0xff]  ;;  %v49_v2 = vld [vmem:[%s331_s0 + $0x10] sm:$0xff]  ;;  %v66_v12 = vrot.slane %v65_v6, 1  ;;  %v80_v13 = vrot.slane %v79_v8, 1 }
   0x2   :  { %46 = vst [vmem:[#allocation0 + $0x8] sm:$0xff] %v45_v0  ;;  %v51_v4 = vld [vmem:[%s331_s0 + $0x18] sm:$0xff]  ;;  %v53_v5 = vld [vmem:[%s331_s0 + $0x20] sm:$0xff]  ;;  %v55_v7 = vld [vmem:[%s331_s0 + $0x28] sm:$0xff]  ;;  %v73_v10 = vshrl.u32 %v72_v3, 7 }
   0x3   :  { %48 = vst [vmem:[#allocation0 + $0x18] sm:$0xff] %v47_v1  ;;  %v57_v9 = vld [vmem:[%s331_s0 + $0x30] sm:$0xff]  ;;  %v59_v11 = vld [vmem:[%s331_s0 + $0x38] sm:$0xff]  ;;  %v93_v14 = vld [vmem:[#allocation0 + $0x27] ss:$-1 sm:$0xff] }
   0x4   :  { %50 = vst [vmem:[#allocation0 + $0x28] sm:$0xff] %v49_v2  ;;  %vm74_vm0 = vcmp.lt.s32.totalorder %v73_v10, 7  ;;  %v107_v16 = vld [vmem:[#allocation0 + $0x37] ss:$-1 sm:$0xff]  ;;  %v94_v19 = vrot.slane %v93_v14, 1 }
   0x5   :  { %52 = vst [vmem:[#allocation0 + $0x38] sm:$0xff] %v51_v4  ;;  %v121_v22 = vld [vmem:[#allocation0 + $0x47] ss:$-1 sm:$0xff]  ;;  %v108_v24 = vrot.slane %v107_v16, 1  ;;  %v135_v28 = vld [vmem:[#allocation0 + $0x57] ss:$-1 sm:$0xff] }
   0x6   :  { %54 = vst [vmem:[#allocation0 + $0x48] sm:$0xff] %v53_v5  ;;  %v122_v29 = vrot.slane %v121_v22, 1  ;;  %v149_v32 = vld [vmem:[#allocation0 + $0x67] ss:$-1 sm:$0xff]  ;;  %v136_v33 = vrot.slane %v135_v28, 1 }
   0x7   :  { %56 = vst [vmem:[#allocation0 + $0x58] sm:$0xff] %v55_v7  ;;  %v163_v36 = vld [vmem:[#allocation0 + $0x77] ss:$-1 sm:$0xff]  ;;  %v150_v37 = vrot.slane %v149_v32, 1 }
   0x8   :  { %58 = vst [vmem:[#allocation0 + $0x68] sm:$0xff] %v57_v9  ;;  %v164_v40 = vrot.slane %v163_v36, 1 }
   0x9   :  { %60 = vst [vmem:[#allocation0 + $0x78] sm:$0xff] %v59_v11  ;;  %v70_v15 = vld [vmem:[#allocation0 + $0xf] ss:$-1 sm:$0xff] }
   0xa   :  { %67 = vst [vmem:[#allocation1] sm:$0xff] %v66_v12  ;;  %v71_v17 = vrot.slane %v70_v15, 1  ;;  %v84_v18 = vld [vmem:[#allocation0 + $0x1f] ss:$-1 sm:$0xff] }
   0xb   :  { %81 = vst [vmem:[#allocation1 + $0x8] sm:$0xff] %v80_v13  ;;  %v85_v20 = vrot.slane %v84_v18, 1  ;;  %v98_v21 = vld [vmem:[#allocation0 + $0x2f] ss:$-1 sm:$0xff] }
   0xc   :  { %75 = vst.msk [vmem:[#allocation1] sm:$0xff] %vm74_vm0, %v71_v17  ;;  %v99_v23 = vrot.slane %v98_v21, 1  ;;  %v112_v25 = vld [vmem:[#allocation0 + $0x3f] ss:$-1 sm:$0xff] }
   0xd   :  { %89 = vst.msk [vmem:[#allocation1 + $0x8] sm:$0xff] %vm74_vm0, %v85_v20  ;;  %v113_v26 = vrot.slane %v112_v25, 1  ;;  %v126_v27 = vld [vmem:[#allocation0 + $0x4f] ss:$-1 sm:$0xff] }
   0xe   :  { %95 = vst [vmem:[#allocation1 + $0x10] sm:$0xff] %v94_v19  ;;  %v140_v30 = vld [vmem:[#allocation0 + $0x5f] ss:$-1 sm:$0xff]  ;;  %v127_v31 = vrot.slane %v126_v27, 1 }
   0xf   :  { %103 = vst.msk [vmem:[#allocation1 + $0x10] sm:$0xff] %vm74_vm0, %v99_v23  ;;  %v154_v34 = vld [vmem:[#allocation0 + $0x6f] ss:$-1 sm:$0xff]  ;;  %v141_v35 = vrot.slane %v140_v30, 1 }
  0x10   :  { %109 = vst [vmem:[#allocation1 + $0x18] sm:$0xff] %v108_v24  ;;  %v168_v38 = vld [vmem:[#allocation0 + $0x7f] ss:$-1 sm:$0xff]  ;;  %v155_v39 = vrot.slane %v154_v34, 1 }
  0x11   :  { %117 = vst.msk [vmem:[#allocation1 + $0x18] sm:$0xff] %vm74_vm0, %v113_v26  ;;  %v169_v41 = vrot.slane %v168_v38, 1 }
  0x12   :  { %123 = vst [vmem:[#allocation1 + $0x20] sm:$0xff] %v122_v29 }
  0x13   :  { %131 = vst.msk [vmem:[#allocation1 + $0x20] sm:$0xff] %vm74_vm0, %v127_v31  ;;  %v216_v42 = vld [vmem:[#allocation1] sm:$0xff] }
  0x14   :  { %137 = vst [vmem:[#allocation1 + $0x28] sm:$0xff] %v136_v33  ;;  %v218_v43 = vld [vmem:[#allocation1 + $0x8] sm:$0xff] }
  0x15   :  { %145 = vst.msk [vmem:[#allocation1 + $0x28] sm:$0xff] %vm74_vm0, %v141_v35 }
  0x16   :  { %151 = vst [vmem:[#allocation1 + $0x30] sm:$0xff] %v150_v37  ;;  %v220_v44 = vld [vmem:[#allocation1 + $0x10] sm:$0xff] }
  0x17   :  { %159 = vst.msk [vmem:[#allocation1 + $0x30] sm:$0xff] %vm74_vm0, %v155_v39 }
  0x18   :  { %165 = vst [vmem:[#allocation1 + $0x38] sm:$0xff] %v164_v40  ;;  %v222_v45 = vld [vmem:[#allocation1 + $0x18] sm:$0xff] }
  0x19   :  { %173 = vst.msk [vmem:[#allocation1 + $0x38] sm:$0xff] %vm74_vm0, %v169_v41 }
  0x1a   :  { %217 = vst [vmem:[%s332_s1] sm:$0xff] %v216_v42  ;;  %v224_v46 = vld [vmem:[#allocation1 + $0x20] sm:$0xff] }
  0x1b   :  { %219 = vst [vmem:[%s332_s1 + $0x8] sm:$0xff] %v218_v43 }
  0x1c   :  { %221 = vst [vmem:[%s332_s1 + $0x10] sm:$0xff] %v220_v44  ;;  %v226_v47 = vld [vmem:[#allocation1 + $0x28] sm:$0xff] }
  0x1d   :  { %223 = vst [vmem:[%s332_s1 + $0x18] sm:$0xff] %v222_v45 }
  0x1e   :  { %225 = vst [vmem:[%s332_s1 + $0x20] sm:$0xff] %v224_v46  ;;  %v228_v48 = vld [vmem:[#allocation1 + $0x30] sm:$0xff] }
  0x1f   :  { %227 = vst [vmem:[%s332_s1 + $0x28] sm:$0xff] %v226_v47 }
  0x20   :  { %229 = vst [vmem:[%s332_s1 + $0x30] sm:$0xff] %v228_v48  ;;  %v230_v49 = vld [vmem:[#allocation1 + $0x38] sm:$0xff] }
  0x21   :  { %231 = vst [vmem:[%s332_s1 + $0x38] sm:$0xff] %v230_v49 }

// kernel: spectral_conv2d_forward.1
= control target key start
LH: loop header
LB: loop body
LE: loop exit
PB: predicated region body
PF: predicated region fallthrough
CT: control target
= control target key end

     0   :  { %s838_s12 = smov 0   ;;  %s840_s13 = smov 0   ;;  %s1002_s0 = inlined_call_operand.vmem [shape: f32[2,4,2,256], index: 0, kind: input, shape index: {}]   ;;  %s1003_s1 = inlined_call_operand.vmem [shape: f32[2,8,4,256], index: 1, kind: input, shape index: {}]   ;;  %s1004_s2 = inlined_call_operand.vmem [shape: f32[2,2,4,128], index: 2, kind: output, shape index: {0}]   ;;  %s1005_s3 = inlined_call_operand.vmem [shape: f32[2,2,4,128], index: 3, kind: output, shape index: {1}]  }
   0x1   :  { %s842_s14 = smov 0  }
   0x2 LB: > { %s33_s15 = sadd.s32 1, %s812_s13  ;;  %p745_p0 = scmp.ge.s32.totalorder %s816_s14, 1  ;;  %s816_s14 = sphi %s842_s14, %s14_s14   ;;  %s812_s13 = sphi %s840_s13, %s1007_s13   ;;  %s808_s12 = sphi %s838_s12, %s1006_s12  }
   0x3   : > { %p35_p1 = scmp.ge.s32.totalorder %s33_s15, 2  ;;  %p189_p2 = scmp.lt.s32.totalorder %s816_s14, 3 }
   0x5   : > { %s1009_s15 = smov (%p35_p1, %s33_s15), 0  ;;  %p190_p3 = pnand %p745_p0, %p189_p2 }
   0x6   : > { %p245_p4 = scmp.lt.s32.totalorder (!%p190_p3), %s808_s12, 1 }
   0x7   : > { %193 = sbr.rel (%p190_p3) target bundleno = 89 (0x59), region = 28 }
   0xc   : > { %s1011_s12 = smov (!%p245_p4, %s808_s12), 1  ;;  %vm297_vm0 = vcmask 1040384   ;;  %vm299_vm1 = vcmask 1042434   ;;  %vm303_vm2 = vcmask 1041409   ;;  %vm305_vm3 = vcmask 1043459  }
   0xd   : > { %s767_s16 = sshll.u32 %s1011_s12, 6  ;;  %s766_s20 = sshll.u32 %s1011_s12, 4  ;;  %vm307_vm4 = vcmask 1042433   ;;  %vm301_vm5 = vcmask 1041408  }
   0xe   : > { %s862_s19 = scalar_lea.vmem %s1003_s1, %s767_s16  ;;  %s888_s23 = scalar_lea.vmem %s1002_s0, %s766_s20 }
   0xf   : > { %v290_v0 = vld [vmem:[%s862_s19] sm:$0xff]  ;;  %v756_v6 = vld [vmem:[%s862_s19 + $0x8] sm:$0xff]  ;;  %v759_v22 = vld [vmem:[%s862_s19 + $0x10] sm:$0xff]  ;;  %s768_s24 = sshll.u32 %s1011_s12, 3 }
  0x10   : > { %319 = vst [vmem:[#allocation1] ss:$2 sm:$0xff] %v290_v0  ;;  %v754_v1 = vld [vmem:[%s862_s19 + $0x20] sm:$0xff]  ;;  %v757_v11 = vld [vmem:[%s862_s19 + $0x28] sm:$0xff]  ;;  %v760_v44 = vld [vmem:[%s862_s19 + $0x30] sm:$0xff]  ;;  %s274_s27 = scalar_lea.vmem %s1004_s2, %s768_s24  ;;  %s287_s30 = scalar_lea.vmem %s1005_s3, %s768_s24 }
  0x11   : > { %323 = vst [vmem:[#allocation1 + $0x10] ss:$2 sm:$0xff] %v290_v0  ;;  %v289_v14 = vld [vmem:[%s888_s23] sm:$0xf]  ;;  %v755_v17 = vld [vmem:[%s888_s23 + $0x4] sm:$0xf] }
  0x12   : > { %v758_v18 = vld [vmem:[%s888_s23 + $0x8] sm:$0xf]  ;;  %v294_v19 = vrot.slane %v289_v14, 1  ;;  %v295_v20 = vrot.slane %v289_v14, 2  ;;  %v296_v21 = vrot.slane %v289_v14, 3  ;;  %v365_v23 = vrot.slane %v755_v17, 1 }
  0x13   : > { %v366_v24 = vrot.slane %v755_v17, 2  ;;  %v367_v25 = vrot.slane %v755_v17, 3  ;;  %v430_v26 = vrot.slane %v758_v18, 1  ;;  %v431_v29 = vrot.slane %v758_v18, 2  ;;  %v761_v45 = vld [vmem:[%s888_s23 + $0xc] sm:$0xf] }
  0x14   : > { %v432_v30 = vrot.slane %v758_v18, 3  ;;  %v304_v31 = vsel %vm303_vm2, %v289_v14, %v294_v19  ;;  %v306_v32 = vsel %vm305_vm3, %v295_v20, %v296_v21  ;;  %v371_v35 = vsel %vm303_vm2, %v755_v17, %v365_v23 }
  0x15   : > { %v372_v36 = vsel %vm305_vm3, %v366_v24, %v367_v25  ;;  %v298_v37 = vsel %vm297_vm0, %v289_v14, %v294_v19  ;;  %v300_v38 = vsel %vm299_vm1, %v295_v20, %v296_v21  ;;  %v308_v39 = vsel %vm307_vm4, %v304_v31, %v306_v32  ;;  %v762_v19 = vld [vmem:[%s862_s19 + $0x18] sm:$0xff] }
  0x16   : > { %v368_v40 = vsel %vm297_vm0, %v755_v17, %v365_v23  ;;  %v369_v41 = vsel %vm299_vm1, %v366_v24, %v367_v25  ;;  %v436_v42 = vsel %vm303_vm2, %v758_v18, %v430_v26  ;;  %v437_v43 = vsel %vm305_vm3, %v431_v29, %v432_v30 }
  0x17   : > { %v866_v2 = vld.sshfl [vmem:[#allocation1] sm:$0xff pattern:$0x75316420]  ;;  %v868_v3 = vld.sshfl [vmem:[#allocation1 + $0x8] sm:$0xff pattern:$0x75316420]  ;;  %v373_v46 = vsel %vm307_vm4, %v371_v35, %v372_v36  ;;  %v925_v47 = vsel %vm301_vm5, %v298_v37, %v300_v38  ;;  %v928_v51 = vsel %vm301_vm5, %v368_v40, %v369_v41  ;;  %v433_v52 = vsel %vm297_vm0, %v758_v18, %v430_v26 }
  0x18   : > { %335 = vst [vmem:[#allocation1] ss:$2 sm:$0xff] %v754_v1  ;;  %v870_v4 = vld.sshfl [vmem:[#allocation1 + $0x10] sm:$0xff pattern:$0x75316420]  ;;  %v309_v48 = vrot.slane %v308_v39, 1  ;;  %v434_v53 = vsel %vm299_vm1, %v431_v29, %v432_v30  ;;  %v438_v54 = vsel %vm307_vm4, %v436_v42, %v437_v43 }
  0x19   : > { %v872_v5 = vld.sshfl [vmem:[#allocation1 + $0x18] sm:$0xff pattern:$0x75316420]  ;;  %v495_v55 = vrot.slane %v761_v45, 1  ;;  %v496_v56 = vrot.slane %v761_v45, 2  ;;  %v497_v57 = vrot.slane %v761_v45, 3  ;;  %v934_v61 = vsel %vm301_vm5, %v433_v52, %v434_v53 }
  0x1a   : > { %339 = vst [vmem:[#allocation1 + $0x10] ss:$2 sm:$0xff] %v754_v1  ;;  %v374_v58 = vrot.slane %v373_v46, 1  ;;  %v439_v62 = vrot.slane %v438_v54, 1  ;;  %v310_v63 = vperm.slane %v925_v47, 0  ;;  %v311_v0 = vperm.slane %v925_v47, 1 }
  0x1b   : > { %v375_v1 = vperm.slane %v928_v51, 0  ;;  %v501_v17 = vsel %vm303_vm2, %v761_v45, %v495_v55  ;;  %v502_v18 = vsel %vm305_vm3, %v496_v56, %v497_v57  ;;  %v440_v20 = vperm.slane %v934_v61, 0 }
  0x1c   : > { %v378_v14 = vperm.slane %v374_v58, 1  ;;  %v441_v21 = vperm.slane %v934_v61, 1  ;;  %v947_v23 = vperm.slane %v309_v48, 1  ;;  %v498_v24 = vsel %vm297_vm0, %v761_v45, %v495_v55 }
  0x1d   : > { %v499_v25 = vsel %vm299_vm1, %v496_v56, %v497_v57  ;;  %v951_v26 = vperm.slane %v439_v62, 0  ;;  %v953_v29 = vperm.slane %v439_v62, 1  ;;  %v503_v36 = vsel %vm307_vm4, %v501_v17, %v502_v18 }
  0x1e   : > { %v330_v37 = vmul.f32 %v866_v2, %v310_v63  ;;  %v331_v42 = vmul.f32 %v868_v3, %v311_v0  ;;  %v333_v2 = vmul.f32 %v872_v5, %v947_v23  ;;  %v504_v45 = vrot.slane %v503_v36, 1 }
  0x1f   : > { %v875_v7 = vld.sshfl [vmem:[#allocation1] sm:$0xff pattern:$0x75316420]  ;;  %v877_v8 = vld.sshfl [vmem:[#allocation1 + $0x8] sm:$0xff pattern:$0x75316420] }
  0x20   : > { %384 = vst [vmem:[#allocation1] ss:$2 sm:$0xff] %v756_v6  ;;  %v507_v53 = vperm.slane %v504_v45, 0  ;;  %v508_v54 = vperm.slane %v504_v45, 1  ;;  %v347_v17 = vmul.f32 %v877_v8, %v311_v0 }
  0x21   : > { %v879_v9 = vld.sshfl [vmem:[#allocation1 + $0x10] sm:$0xff pattern:$0x75316420]  ;;  %v881_v10 = vld.sshfl [vmem:[#allocation1 + $0x18] sm:$0xff pattern:$0x75316420] }
  0x22   : > { %388 = vst [vmem:[#allocation1 + $0x10] ss:$2 sm:$0xff] %v756_v6  ;;  %v376_v6 = vperm.slane %v928_v51, 1 }
  0x27   : > { %v890_v12 = vld.sshfl [vmem:[#allocation1] sm:$0xff pattern:$0x75316420]  ;;  %v892_v13 = vld.sshfl [vmem:[#allocation1 + $0x8] sm:$0xff pattern:$0x75316420] }
  0x28   : > { %400 = vst [vmem:[#allocation1] ss:$2 sm:$0xff] %v757_v11  ;;  %v395_v32 = vmul.f32 %v890_v12, %v375_v1  ;;  %v396_v35 = vmul.f32 %v892_v13, %v376_v6  ;;  %v500_v12 = vsel %vm301_vm5, %v498_v24, %v499_v25 }
  0x29   : > { %v895_v15 = vld.sshfl [vmem:[#allocation1 + $0x10] sm:$0xff pattern:$0x75316420]  ;;  %v897_v16 = vld.sshfl [vmem:[#allocation1 + $0x18] sm:$0xff pattern:$0x75316420] }
  0x2a   : > { %404 = vst [vmem:[#allocation1 + $0x10] ss:$2 sm:$0xff] %v757_v11  ;;  %v377_v11 = vperm.slane %v374_v58, 0  ;;  %v398_v39 = vmul.f32 %v897_v16, %v378_v14  ;;  %v505_v47 = vperm.slane %v500_v12, 0 }
  0x2c   : > { %v397_v38 = vmul.f32 %v895_v15, %v377_v11  ;;  %v415_v15 = vsub.f32 %v395_v32, %v396_v35 }
  0x2e   : > { %v416_v3 = vsub.f32 %v397_v38, %v398_v39 }
  0x2f   : > { %v902_v27 = vld.sshfl [vmem:[#allocation1] sm:$0xff pattern:$0x75316420]  ;;  %v904_v28 = vld.sshfl [vmem:[#allocation1 + $0x8] sm:$0xff pattern:$0x75316420] }
  0x30   : > { %449 = vst [vmem:[#allocation1] ss:$2 sm:$0xff] %v759_v22  ;;  %v411_v58 = vmul.f32 %v902_v27, %v375_v1 }
  0x31   : > { %v908_v33 = vld.sshfl [vmem:[#allocation1 + $0x10] sm:$0xff pattern:$0x75316420]  ;;  %v910_v34 = vld.sshfl [vmem:[#allocation1 + $0x18] sm:$0xff pattern:$0x75316420] }
  0x32   : > { %453 = vst [vmem:[#allocation1 + $0x10] ss:$2 sm:$0xff] %v759_v22  ;;  %v945_v22 = vperm.slane %v309_v48, 0  ;;  %v506_v48 = vperm.slane %v500_v12, 1  ;;  %v414_v25 = vmul.f32 %v910_v34, %v378_v14 }
  0x34   : > { %v332_v13 = vmul.f32 %v870_v4, %v945_v22  ;;  %v346_v4 = vmul.f32 %v875_v7, %v310_v63  ;;  %v413_v63 = vmul.f32 %v908_v33, %v377_v11  ;;  %v348_v0 = vmul.f32 %v879_v9, %v945_v22 }
  0x35   : > { %v349_v33 = vmul.f32 %v881_v10, %v947_v23 }
  0x36   : > { %v351_v52 = vsub.f32 %v332_v13, %v333_v2 }
  0x37   : > { %v450_v49 = vld.sshfl [vmem:[#allocation1] sm:$0xff pattern:$0x75316420]  ;;  %v451_v50 = vld.sshfl [vmem:[#allocation1 + $0x8] sm:$0xff pattern:$0x75316420]  ;;  %v355_v38 = vadd.f32 %v349_v33, %v348_v0 }
  0x38   : > { %465 = vst [vmem:[#allocation1] ss:$2 sm:$0xff] %v760_v44  ;;  %v460_v43 = vmul.f32 %v450_v49, %v440_v20  ;;  %v763_v49 = vld [vmem:[%s862_s19 + $0x38] sm:$0xff]  ;;  %v418_v62 = vadd.f32 %v416_v3, %v351_v52 }
  0x39   : > { %v454_v59 = vld.sshfl [vmem:[#allocation1 + $0x10] sm:$0xff pattern:$0x75316420]  ;;  %v455_v60 = vld.sshfl [vmem:[#allocation1 + $0x18] sm:$0xff pattern:$0x75316420] }
  0x3a   : > { %469 = vst [vmem:[#allocation1 + $0x10] ss:$2 sm:$0xff] %v760_v44  ;;  %v461_v44 = vmul.f32 %v451_v50, %v441_v21  ;;  %v462_v16 = vmul.f32 %v454_v59, %v951_v26  ;;  %v463_v46 = vmul.f32 %v455_v60, %v953_v29  ;;  %v350_v50 = vsub.f32 %v330_v37, %v331_v42 }
  0x3b   : > { %v412_v59 = vmul.f32 %v904_v28, %v376_v6 }
  0x3c   : > { %v480_v51 = vsub.f32 %v460_v43, %v461_v44  ;;  %v417_v56 = vadd.f32 %v415_v15, %v350_v50  ;;  %v481_v57 = vsub.f32 %v462_v16, %v463_v46 }
  0x3d   : > { %v419_v8 = vadd.f32 %v412_v59, %v411_v58 }
  0x3e   : > { %v482_v24 = vadd.f32 %v480_v51, %v417_v56  ;;  %v483_v32 = vadd.f32 %v481_v57, %v418_v62 }
  0x3f   : > { %v466_v30 = vld.sshfl [vmem:[#allocation1] sm:$0xff pattern:$0x75316420]  ;;  %v467_v31 = vld.sshfl [vmem:[#allocation1 + $0x8] sm:$0xff pattern:$0x75316420] }
  0x40   : > { %514 = vst [vmem:[#allocation1] ss:$2 sm:$0xff] %v762_v19  ;;  %v476_v7 = vmul.f32 %v466_v30, %v440_v20  ;;  %v477_v6 = vmul.f32 %v467_v31, %v441_v21  ;;  %v420_v21 = vadd.f32 %v414_v25, %v413_v63  ;;  %v354_v31 = vadd.f32 %v347_v17, %v346_v4 }
  0x41   : > { %v470_v40 = vld.sshfl [vmem:[#allocation1 + $0x10] sm:$0xff pattern:$0x75316420]  ;;  %v471_v41 = vld.sshfl [vmem:[#allocation1 + $0x18] sm:$0xff pattern:$0x75316420] }
  0x42   : > { %518 = vst [vmem:[#allocation1 + $0x10] ss:$2 sm:$0xff] %v762_v19  ;;  %v478_v14 = vmul.f32 %v470_v40, %v951_v26  ;;  %v479_v20 = vmul.f32 %v471_v41, %v953_v29  ;;  %v484_v35 = vadd.f32 %v477_v6, %v476_v7  ;;  %v421_v9 = vadd.f32 %v419_v8, %v354_v31 }
  0x43   : > { %v422_v23 = vadd.f32 %v420_v21, %v355_v38 }
  0x44   : > { %v485_v10 = vadd.f32 %v479_v20, %v478_v14  ;;  %v486_v26 = vadd.f32 %v484_v35, %v421_v9 }
  0x46   : > { %v487_v12 = vadd.f32 %v485_v10, %v422_v23 }
  0x47   : > { %v515_v55 = vld.sshfl [vmem:[#allocation1] sm:$0xff pattern:$0x75316420]  ;;  %v516_v5 = vld.sshfl [vmem:[#allocation1 + $0x8] sm:$0xff pattern:$0x75316420] }
  0x48   : > { %530 = vst [vmem:[#allocation1] ss:$2 sm:$0xff] %v763_v49  ;;  %v525_v60 = vmul.f32 %v515_v55, %v505_v47  ;;  %v526_v61 = vmul.f32 %v516_v5, %v506_v48 }
  0x49   : > { %v519_v18 = vld.sshfl [vmem:[#allocation1 + $0x10] sm:$0xff pattern:$0x75316420]  ;;  %v520_v19 = vld.sshfl [vmem:[#allocation1 + $0x18] sm:$0xff pattern:$0x75316420] }
  0x4a   : > { %534 = vst [vmem:[#allocation1 + $0x10] ss:$2 sm:$0xff] %v763_v49  ;;  %v545_v27 = vsub.f32 %v525_v60, %v526_v61  ;;  %v527_v1 = vmul.f32 %v519_v18, %v507_v53  ;;  %v528_v28 = vmul.f32 %v520_v19, %v508_v54 }
  0x4c   : > { %v547_v11 = vadd.f32 %v545_v27, %v482_v24  ;;  %v546_v34 = vsub.f32 %v527_v1, %v528_v28 }
  0x4e   : > { %553 = vst [vmem:[%s274_s27] sm:$0xf] %v547_v11  ;;  %v548_v30 = vadd.f32 %v546_v34, %v483_v32 }
  0x4f   : > { %v531_v36 = vld.sshfl [vmem:[#allocation1] sm:$0xff pattern:$0x75316420]  ;;  %v532_v37 = vld.sshfl [vmem:[#allocation1 + $0x8] sm:$0xff pattern:$0x75316420] }
  0x50   : > { %554 = vst [vmem:[%s274_s27 + $0x4] sm:$0xf] %v548_v30  ;;  %v541_v22 = vmul.f32 %v531_v36, %v505_v47  ;;  %v542_v39 = vmul.f32 %v532_v37, %v506_v48 }
  0x51   : > { %v535_v42 = vld.sshfl [vmem:[#allocation1 + $0x10] sm:$0xff pattern:$0x75316420]  ;;  %v536_v43 = vld.sshfl [vmem:[#allocation1 + $0x18] sm:$0xff pattern:$0x75316420] }
  0x52   : > { %v549_v40 = vadd.f32 %v542_v39, %v541_v22  ;;  %v543_v29 = vmul.f32 %v535_v42, %v507_v53  ;;  %v544_v41 = vmul.f32 %v536_v43, %v508_v54 }
  0x54   : > { %v551_v44 = vadd.f32 %v549_v40, %v486_v26  ;;  %v550_v13 = vadd.f32 %v544_v41, %v543_v29 }
  0x56   : > { %555 = vst [vmem:[%s287_s30] sm:$0xf] %v551_v44  ;;  %v552_v2 = vadd.f32 %v550_v13, %v487_v12 }
  0x58   : > { %556 = vst [vmem:[%s287_s30 + $0x4] sm:$0xf] %v552_v2 }
  0x59 PF: > { %s14_s14 = sadd.s32 1, %s816_s14   ;;  %s1006_s12 = smov %s812_s13 }
  0x5a   : > { %p11_p5 = scmp.ge.s32.totalorder %s14_s14, 4   ;;  %s1007_s13 = smov %s1009_s15 }
  0x5c   :  { %13 = sbr.rel (!%p11_p5) target bundleno = 2 (0x2), region = 91 }

</bundles_post_ra>
